<compile_context>
chip_gen: v6e
topology: v6e:2x2x1
jax: 0.10.0
libtpu: 0.0.40
codegen_flags: <defaults>
</compile_context>

<pallas_src>
import jax
import jax.numpy as jnp
from jax.experimental import pallas as pl
from jax.experimental.pallas import tpu as pltpu


def _round_up(v: int, m: int) -> int:
    return (v + m - 1) // m * m


def _vmem_ceiling_bytes() -> int:
    """Generation-aware VMEM cap with headroom (safe on v5e/v6e/v7x)."""
    try:
        info = pltpu.get_tpu_info()
        cap = int(getattr(info, "vmem_capacity_bytes", 64 * 1024 * 1024))
    except Exception:
        cap = 64 * 1024 * 1024          # conservative: v7x per-TC VMEM
    return max(32 * 1024 * 1024, cap - 16 * 1024 * 1024)


def _make_agg_kernel(tk: int, h_resident: bool):
    """out = A_hat @ H + b   (H = X @ W precomputed in the wrapper)."""

    def kernel(a_ref, h_ref, b_ref, o_ref):
        k = pl.program_id(1)

        @pl.when(k == 0)
        def _init():
            # Seed the resident f32 output block with the bias row.
            o_ref[...] = jnp.broadcast_to(b_ref[...], o_ref.shape)

        if h_resident:
            start = pl.multiple_of(k * tk, tk)
            h = h_ref[pl.ds(start, tk), :]
        else:
            h = h_ref[...]

        # Dominant matmul: bf16 operands, f32 MXU accumulation straight into
        # the resident output block (no scratch, no finalize step).
        o_ref[...] += jnp.dot(a_ref[...], h, preferred_element_type=jnp.float32)

    return kernel


def _make_fused_kernel(tk: int, x_resident: bool):
    """out = (A_hat @ X) @ W + b   (used only when f_in_pad < f_out_pad)."""

    def kernel(a_ref, x_ref, w_ref, b_ref, o_ref, acc_ref):
        k = pl.program_id(1)

        @pl.when(k == 0)
        def _init():
            acc_ref[...] = jnp.zeros_like(acc_ref)

        if x_resident:
            start = pl.multiple_of(k * tk, tk)
            xb = x_ref[pl.ds(start, tk), :]
        else:
            xb = x_ref[...]

        acc_ref[...] += jnp.dot(a_ref[...], xb,
                                preferred_element_type=jnp.float32)

        @pl.when(k == pl.num_programs(1) - 1)
        def _finalize():
            # bf16 epilogue matmul (no native f32 MXU path), f32 accumulation.
            out = jnp.dot(acc_ref[...].astype(jnp.bfloat16), w_ref[...],
                          preferred_element_type=jnp.float32)
            o_ref[...] = (out + b_ref[...]).astype(o_ref.dtype)

    return kernel


def gcn_forward(x, edge_index, weight, bias):
    """GCNConv forward pass.

    x          : [N, F_in]   float32
    edge_index : [2, E]      int32   (row = source, col = target)
    weight     : [F_in, F_out]
    bias       : [F_out]
    returns    : [N, F_out]  float32
    """
    N, f_in = x.shape
    f_out = weight.shape[1]

    # ---------- glue: dense symmetric-normalized adjacency (A + I) ----------
    # NOTE: self-loops are concatenated unconditionally (matches the f32
    # reference below; PyG's add_remaining_self_loops would skip duplicates).
    self_loops = jnp.arange(N, dtype=edge_index.dtype)
    row = jnp.concatenate([edge_index[0], self_loops])   # source nodes
    col = jnp.concatenate([edge_index[1], self_loops])   # target nodes

    ones = jnp.ones(row.shape[0], dtype=jnp.float32)
    deg = jnp.zeros((N,), dtype=jnp.float32).at[col].add(ones)
    deg_inv_sqrt = jnp.where(deg > 0, jax.lax.rsqrt(deg), 0.0)
    norm = deg_inv_sqrt[row] * deg_inv_sqrt[col]

    # ---------- padding / tile selection ----------
    f_in_pad = _round_up(f_in, 128)               # lane-dense
    f_out_pad = _round_up(f_out, 128)              # lane-dense unmasked stores
    n_pad = _round_up(N, 256)

    # Row tile: up to 512, but keep >= 2 row tiles when possible (v7x has two
    # TensorCores; the "parallel" axis shards across them).
    tm = 256
    if n_pad % 512 == 0 and n_pad // 512 >= 2:
        tm = 512
    # Contraction tile: largest of these dividing n_pad (big DMAs, amortizes
    # the ~0.35 us per-grid-step overhead; A tile stays <= 4 MiB bf16).
    tk = 256
    for cand in (512, 1024, 2048):
        if n_pad % cand == 0:
            tk = cand

    # A_hat[dst, src] = norm, built directly at padded size (pad rows/cols = 0).
    a_hat = jnp.zeros((n_pad, n_pad), dtype=jnp.float32).at[col, row].add(norm)
    a_bf16 = a_hat.astype(jnp.bfloat16)
    # TODO(synk): v7x-only option: store A_hat in fp8 (e4m3) to halve the
    # dominant HBM stream; needs accuracy validation.

    # ---------- contraction-order choice ----------
    precompute_xw = f_out_pad <= f_in_pad
    if precompute_xw:
        # Tiny XW done once in XLA; kernel only does the big aggregation.
        h = x.astype(jnp.float32) @ weight.astype(jnp.float32)      # [N,F_out]
        h_pad = jnp.pad(h, ((0, n_pad - N), (0, f_out_pad - f_out))
                        ).astype(jnp.bfloat16)
        f_pad = f_out_pad
        w_pad = None
    else:
        h_pad = jnp.pad(x.astype(jnp.float32),
                        ((0, n_pad - N), (0, f_in_pad - f_in))
                        ).astype(jnp.bfloat16)
        f_pad = f_in_pad
        w_pad = jnp.pad(weight.astype(jnp.float32),
                        ((0, f_in_pad - f_in), (0, f_out_pad - f_out))
                        ).astype(jnp.bfloat16)

    b_pad = jnp.pad(bias.astype(jnp.float32), (0, f_out_pad - f_out)
                    ).reshape(1, f_out_pad)

    # ---------- VMEM budget / residency decision ----------
    h_bytes = n_pad * f_pad * 2
    h_resident = h_bytes <= 16 * 1024 * 1024      # keep resident-X modest
    a_tiles_bytes = 2 * tm * tk * 2               # double-buffered bf16 A
    out_bytes = 2 * tm * f_out_pad * 4            # double-buffered f32 out
    acc_bytes = 0 if precompute_xw else tm * f_pad * 4
    w_bytes = 0 if precompute_xw else f_in_pad * f_out_pad * 2
    h_vmem = h_bytes if h_resident else 2 * tk * f_pad * 2
    footprint = (a_tiles_bytes + out_bytes + acc_bytes + w_bytes + h_vmem
                 + 2 * f_out_pad * 4 + (1 << 20))

    vmem_limit = int(min(_vmem_ceiling_bytes(),
                         max(32 * 1024 * 1024, footprint + (8 << 20))))

    grid = (n_pad // tm, n_pad // tk)

    a_spec = pl.BlockSpec((tm, tk), lambda i, k: (i, k))
    if h_resident:
        h_spec = pl.BlockSpec((n_pad, f_pad), lambda i, k: (0, 0))
    else:
        h_spec = pl.BlockSpec((tk, f_pad), lambda i, k: (k, 0))
    b_spec = pl.BlockSpec((1, f_out_pad), lambda i, k: (0, 0))
    out_spec = pl.BlockSpec((tm, f_out_pad), lambda i, k: (i, 0))

    # ---------- cost estimate (honest about H re-stream factor) ----------
    flops = 2 * n_pad * n_pad * f_pad
    if not precompute_xw:
        flops += 2 * n_pad * f_in_pad * f_out_pad
    h_traffic = h_bytes if h_resident else h_bytes * (n_pad // tm)
    cost = pl.CostEstimate(
        flops=flops,
        transcendentals=0,
        bytes_accessed=(n_pad * n_pad * 2        # A_hat bf16
                        + h_traffic              # H (resident or re-streamed)
                        + w_bytes                # W bf16 (fused path only)
                        + f_out_pad * 4          # bias
                        + n_pad * f_out_pad * 4  # out f32
                        ),
    )

    compiler_params = pltpu.CompilerParams(
        dimension_semantics=("parallel", "arbitrary"),
        vmem_limit_bytes=vmem_limit,
    )

    if precompute_xw:
        kernel = _make_agg_kernel(tk, h_resident)
        in_specs = [a_spec, h_spec, b_spec]
        scratch_shapes = []
        args = (a_bf16, h_pad, b_pad)
    else:
        kernel = _make_fused_kernel(tk, h_resident)
        w_spec = pl.BlockSpec((f_in_pad, f_out_pad), lambda i, k: (0, 0))
        in_specs = [a_spec, h_spec, w_spec, b_spec]
        scratch_shapes = [pltpu.VMEM((tm, f_pad), jnp.float32)]
        args = (a_bf16, h_pad, w_pad, b_pad)

    out_pad = pl.pallas_call(
        kernel,
        out_shape=jax.ShapeDtypeStruct((n_pad, f_out_pad), jnp.float32),
        grid_spec=pltpu.PrefetchScalarGridSpec(
            num_scalar_prefetch=0,
            grid=grid,
            in_specs=in_specs,
            out_specs=out_spec,
            scratch_shapes=scratch_shapes,
        ),
        compiler_params=compiler_params,
        cost_estimate=cost,
    )(*args)

    return out_pad[:N, :f_out]


def _gcn_reference(x, edge_index, weight, bias):
    """Pure-JAX f32 reference (GCNConv semantics) for validation."""
    N = x.shape[0]
    self_loops = jnp.arange(N, dtype=edge_index.dtype)
    row = jnp.concatenate([edge_index[0], self_loops])
    col = jnp.concatenate([edge_index[1], self_loops])
    ones = jnp.ones(row.shape[0], dtype=jnp.float32)
    deg = jnp.zeros((N,), dtype=jnp.float32).at[col].add(ones)
    dis = jnp.where(deg > 0, jax.lax.rsqrt(deg), 0.0)
    norm = dis[row] * dis[col]
    a_hat = jnp.zeros((N, N), dtype=jnp.float32).at[col, row].add(norm)
    return a_hat @ (x @ weight) + bias[None, :]


if __name__ == "__main__":
    key = jax.random.PRNGKey(0)
    k_x, k_w, k_e = jax.random.split(key, 3)

    N = 16            # number of nodes
    IN_CH = 8         # in_channels
    OUT_CH = 32       # out_channels
    E = 40            # number of directed edges

    # deterministic inputs
    x = jax.random.normal(k_x, (N, IN_CH), dtype=jnp.float32)
    edge_index = jax.random.randint(k_e, (2, E), 0, N, dtype=jnp.int32)

    # deterministic parameter init (glorot-style weight, zero bias — matches
    # GCNConv's default init scheme shapes)
    limit = (6.0 / (IN_CH + OUT_CH)) ** 0.5
    weight = jax.random.uniform(
        k_w, (IN_CH, OUT_CH), minval=-limit, maxval=limit, dtype=jnp.float32
    )
    bias = jnp.zeros((OUT_CH,), dtype=jnp.float32)

    out = gcn_forward(x, edge_index, weight, bias)
    out = jax.block_until_ready(out)

    ref = _gcn_reference(x, edge_index, weight, bias)

    assert out.shape == (N, OUT_CH)
    assert bool(jnp.all(jnp.isfinite(out)))
    # bf16 operands on the dominant matmul -> loose tolerance vs f32 reference.
    assert jnp.allclose(out, ref, rtol=5e-2, atol=5e-2), (
        float(jnp.max(jnp.abs(out - ref)))
    )
    print("KERNEL_OK")
</pallas_src>

<mosaic_0001>
module attributes {stable_mosaic.version = 11 : i64} {
  func.func @kernel(%arg0: i32, %arg1: i32, %arg2: memref<256x256xbf16, #tpu.memory_space<vmem>>, %arg3: memref<256x128xbf16, #tpu.memory_space<vmem>>, %arg4: memref<1x128xf32, #tpu.memory_space<vmem>>, %arg5: memref<256x128xf32, #tpu.memory_space<vmem>>) attributes {dimension_semantics = [#tpu.dimension_semantics<parallel>, #tpu.dimension_semantics<arbitrary>], iteration_bounds = array<i64: 1, 1>, scalar_prefetch = 0 : i64, scratch_operands = 0 : i64, tpu.core_type = #tpu.core_type<tc>, window_params = [{transform_indices = @transform_0, window_bounds = array<i64: 256, 256>}, {pipeline_mode = #tpu.pipeline_mode<synchronous>, transform_indices = @transform_1, window_bounds = array<i64: 256, 128>}, {pipeline_mode = #tpu.pipeline_mode<synchronous>, transform_indices = @transform_2, window_bounds = array<i64: 1, 128>}, {transform_indices = @transform_3, window_bounds = array<i64: 256, 128>}]} {
    %c0_i32 = arith.constant 0 : i32
    %0 = arith.cmpi eq, %arg1, %c0_i32 : i32
    %1 = arith.extui %0 : i1 to i32
    %c0_i32_0 = arith.constant 0 : i32
    %2 = arith.cmpi ne, %1, %c0_i32_0 : i32
    scf.if %2 {
      %c0_7 = arith.constant 0 : index
      %c0_8 = arith.constant 0 : index
      %12 = vector.load %arg4[%c0_7, %c0_8] : memref<1x128xf32, #tpu.memory_space<vmem>>, vector<1x128xf32>
      %13 = vector.shape_cast %12 : vector<1x128xf32> to vector<1x128xf32>
      %14 = vector.broadcast %13 : vector<1x128xf32> to vector<256x128xf32>
      %c0_9 = arith.constant 0 : index
      %c0_10 = arith.constant 0 : index
      %15 = vector.load %arg5[%c0_9, %c0_10] : memref<256x128xf32, #tpu.memory_space<vmem>>, vector<256x128xf32>
      tpu.vector_store %arg5[%c0_9, %c0_10], %14 {strides = array<i32>} : memref<256x128xf32, #tpu.memory_space<vmem>>, vector<256x128xf32>,
    } else {
    }
    %c256_i32 = arith.constant 256 : i32
    %3 = arith.muli %arg1, %c256_i32 : i32
    %4 = tpu.assume_multiple %3, 256 : i32
    %5 = arith.index_cast %4 : i32 to index
    %c0 = arith.constant 0 : index
    %6 = vector.load %arg3[%5, %c0] : memref<256x128xbf16, #tpu.memory_space<vmem>>, vector<256x128xbf16>
    %c0_1 = arith.constant 0 : index
    %c0_2 = arith.constant 0 : index
    %7 = vector.load %arg5[%c0_1, %c0_2] : memref<256x128xf32, #tpu.memory_space<vmem>>, vector<256x128xf32>
    %c0_3 = arith.constant 0 : index
    %c0_4 = arith.constant 0 : index
    %8 = vector.load %arg2[%c0_3, %c0_4] : memref<256x256xbf16, #tpu.memory_space<vmem>>, vector<256x256xbf16>
    %cst = arith.constant dense<0.000000e+00> : vector<256x128xf32>
    %9 = tpu.matmul %8, %6, %cst {dimension_numbers = #tpu.dot_dimension_numbers<[1], [0], [0], [1], [0, 0, 1, 1], [], []>} : vector<256x256xbf16>, vector<256x128xbf16>, vector<256x128xf32> -> vector<256x128xf32>
    %10 = arith.addf %7, %9 : vector<256x128xf32>
    %c0_5 = arith.constant 0 : index
    %c0_6 = arith.constant 0 : index
    %11 = vector.load %arg5[%c0_5, %c0_6] : memref<256x128xf32, #tpu.memory_space<vmem>>, vector<256x128xf32>
    tpu.vector_store %arg5[%c0_5, %c0_6], %10 {strides = array<i32>} : memref<256x128xf32, #tpu.memory_space<vmem>>, vector<256x128xf32>,
    return
  }
  func.func @transform_0(%arg0: i32, %arg1: i32) -> (i32, i32) {
    %c0_i32 = arith.constant 0 : i32
    return %arg0, %arg1 : i32, i32
  }
  func.func @transform_1(%arg0: i32, %arg1: i32) -> (i32, i32) {
    %c0_i32 = arith.constant 0 : i32
    %c0_i32_0 = arith.constant 0 : i32
    %c0_i32_1 = arith.constant 0 : i32
    return %c0_i32, %c0_i32_0 : i32, i32
  }
  func.func @transform_2(%arg0: i32, %arg1: i32) -> (i32, i32) {
    %c0_i32 = arith.constant 0 : i32
    %c0_i32_0 = arith.constant 0 : i32
    %c0_i32_1 = arith.constant 0 : i32
    return %c0_i32, %c0_i32_0 : i32, i32
  }
  func.func @transform_3(%arg0: i32, %arg1: i32) -> (i32, i32) {
    %c0_i32 = arith.constant 0 : i32
    %c0_i32_0 = arith.constant 0 : i32
    return %arg0, %c0_i32 : i32, i32
  }
}

</mosaic_0001>

<bundles_post_ra>
// kernel: tpu_custom_call.1
= control target key start
LH: loop header
LB: loop body
LE: loop exit
PB: predicated region body
PF: predicated region fallthrough
CT: control target
= control target key end

     0   :  { %8 = vsyncpa [#allocation3], 0  ;;  %s1082_s0 = inlined_call_operand.hbm [shape: bf16[256,256], index: 0, kind: input, shape index: {}]   ;;  %s1083_s1 = inlined_call_operand.hbm [shape: bf16[256,128], index: 1, kind: input, shape index: {}]   ;;  %s1084_s2 = inlined_call_operand.vmem [shape: f32[1,128], index: 2, kind: input, shape index: {}]   ;;  %s1085_s3 = inlined_call_operand.hbm [shape: f32[256,128], index: 3, kind: output, shape index: {}]  }
   0x1   :  { %9 = vsyncpa [#allocation6], 0 }
   0x2   :  { %10 = vsyncpa [#allocation4], 0  ;;  %s1003_s12 = smov [#allocation2]  }
   0x3   :  { %s16_s13 = sshll.u32 %s1003_s12, 4  ;;  %s17_s13 = int_to_ptr.vmem [resolvable:$true] %s16_s13 }
   0x4   :  { %s945_s14 = scalar_lea.vmem %s17_s13, 4096  ;;  %p950_p1 = scmp.lt.s32.totalorder %s17_s13, %s17_s13 }
   0x5   :  { %p946_p0 = scmp.ne.s32.totalorder %s17_s13, %s945_s14  ;;  %p951_p2 = scmp.lt.s32.totalorder %s945_s14, %s945_s14 }
   0x7   :  { %p952_p3 = por %p951_p2, %p950_p1 }
   0x9   :  { %p953_p4 = pnand %p952_p3, %p946_p0 }
   0xb   :  { %956 = shalt.err (!%p953_p4)
}
   0xc   :  { %s1004_s15 = smov 128   ;;  %s1005_s16 = smov 8  }
   0xd   :  { %22 = dma.hbm_to_vmem [thread:$0]  %s1082_s0, 4096, %s17_s13, [#allocation3], %s1004_s15, %s1004_s15, %s1005_s16  }
   0xe   :  { %s1006_s19 = smov [#allocation5]  }
   0xf   :  { %s28_s20 = sshll.u32 %s1006_s19, 4  ;;  %s29_s20 = int_to_ptr.vmem [resolvable:$true] %s28_s20 }
  0x10   :  { %s965_s21 = scalar_lea.vmem %s29_s20, 2048  ;;  %p970_p6 = scmp.lt.s32.totalorder %s29_s20, %s29_s20 }
  0x11   :  { %p966_p5 = scmp.ne.s32.totalorder %s29_s20, %s965_s21  ;;  %p971_p7 = scmp.lt.s32.totalorder %s965_s21, %s965_s21 }
  0x13   :  { %p972_p8 = por %p971_p7, %p970_p6 }
  0x15   :  { %p973_p9 = pnand %p972_p8, %p966_p5 }
  0x17   :  { %976 = shalt.err (!%p973_p9)
}
  0x18   :  { %s1007_s22 = smov 64   ;;  %s1008_s23 = smov 4  }
  0x19   :  { %34 = dma.hbm_to_vmem [thread:$0]  %s1083_s1, 2048, %s29_s20, [#allocation6], %s1007_s22, %s1007_s22, %s1008_s23  }
  0x1a   :  { %997 = dma.done.wait [#allocation3], 4096  }
  0x1b   :  { %998 = vsyncadd [#allocation3], 4294963200 }
  0x1c   :  { %999 = dma.done.wait [#allocation6], 2048  }
  0x1d   :  { %1000 = vsyncadd [#allocation6], 4294965248  ;;  %v873_v0 = vld [vmem:[#allocation5 + $0x78] sm:$0xff]   ;;  %v875_v2 = vld [vmem:[#allocation5 + $0x70] sm:$0xff]  }
  0x1e   :  { %v874_v1 = vld [vmem:[#allocation5 + $0x38] sm:$0xff]   ;;  %738 = vmatprep.subr.bf16.mxu0 %v873_v0  ;;  %850 = vmatprep.subr.bf16.mxu1 %v873_v0  ;;  %v876_v3 = vld [vmem:[#allocation5 + $0x30] sm:$0xff]   ;;  %v877_v4 = vld [vmem:[#allocation5 + $0x68] sm:$0xff]  }
  0x1f   :  { %739 = vmatpush3.bf16.msra.mxu0 %v874_v1  ;;  %858 = vmatpush3.bf16.msra.mxu1 %v874_v1  ;;  %v878_v5 = vld [vmem:[#allocation5 + $0x28] sm:$0xff]   ;;  %v879_v6 = vld [vmem:[#allocation5 + $0x60] sm:$0xff]   ;;  %v881_v8 = vld [vmem:[#allocation5 + $0x58] sm:$0xff]  }
  0x20   :  { %740 = vmatprep.subr.bf16.mxu0 %v875_v2  ;;  %851 = vmatprep.subr.bf16.mxu1 %v875_v2  ;;  %v880_v7 = vld [vmem:[#allocation5 + $0x20] sm:$0xff]   ;;  %v882_v9 = vld [vmem:[#allocation5 + $0x18] sm:$0xff]   ;;  %v883_v10 = vld [vmem:[#allocation5 + $0x50] sm:$0xff]  }
  0x21   :  { %v891_v11 = vld [vmem:[#allocation2 + $0x4] ss:$8 sps:$4 sm:$0xff]   ;;  %v884_v13 = vld [vmem:[#allocation5 + $0x10] sm:$0xff]   ;;  %v889_v18 = vld [vmem:[#allocation2] ss:$8 sps:$4 sm:$0xff]  }
  0x22   :  { %v894_v12 = vld [vmem:[#allocation2 + $0x84] ss:$8 sps:$4 sm:$0xff]   ;;  %476 = vmatprep.mubr.bf16.mxu0 %v891_v11  ;;  %v892_v19 = vld [vmem:[#allocation2 + $0x80] ss:$8 sps:$4 sm:$0xff]   ;;  %v895_v20 = vld [vmem:[#allocation2 + $0x14] ss:$8 sps:$4 sm:$0xff]  }
  0x23   :  { %741 = vmatpush3.bf16.msra.mxu0 %v876_v3  ;;  %859 = vmatpush3.bf16.msra.mxu1 %v876_v3  ;;  %v885_v14 = vld [vmem:[#allocation5 + $0x48] sm:$0xff]   ;;  %v887_v16 = vld [vmem:[#allocation5 + $0x40] sm:$0xff]   ;;  %v897_v21 = vld [vmem:[#allocation2 + $0x94] ss:$8 sps:$4 sm:$0xff]  }
  0x24   :  { %742 = vmatprep.subr.bf16.mxu0 %v877_v4  ;;  %852 = vmatprep.subr.bf16.mxu1 %v877_v4  ;;  %v886_v15 = vld [vmem:[#allocation5 + $0x8] sm:$0xff]   ;;  %v888_v17 = vld [vmem:[#allocation5] sm:$0xff]   ;;  %v899_v22 = vld [vmem:[#allocation2 + $0x10] ss:$8 sps:$4 sm:$0xff]  }
  0x25   :  { %540 = vmatprep.mubr.bf16.mxu1 %v894_v12  ;;  %v900_v23 = vld [vmem:[#allocation2 + $0x90] ss:$8 sps:$4 sm:$0xff]   ;;  %v901_v24 = vld [vmem:[#allocation2 + $0x24] ss:$8 sps:$4 sm:$0xff]   ;;  %v905_v26 = vld [vmem:[#allocation2 + $0x20] ss:$8 sps:$4 sm:$0xff]  }
  0x26   :  { %v903_v25 = vld [vmem:[#allocation2 + $0xa4] ss:$8 sps:$4 sm:$0xff]   ;;  %v906_v27 = vld [vmem:[#allocation2 + $0xa0] ss:$8 sps:$4 sm:$0xff]   ;;  %v907_v28 = vld [vmem:[#allocation2 + $0x34] ss:$8 sps:$4 sm:$0xff]  }
  0x27   :  { %743 = vmatpush3.bf16.msra.mxu0 %v878_v5  ;;  %860 = vmatpush3.bf16.msra.mxu1 %v878_v5  ;;  %v909_v29 = vld [vmem:[#allocation2 + $0xb4] ss:$8 sps:$4 sm:$0xff]   ;;  %v911_v30 = vld [vmem:[#allocation2 + $0x30] ss:$8 sps:$4 sm:$0xff]   ;;  %v913_v32 = vld [vmem:[#allocation2 + $0x44] ss:$8 sps:$4 sm:$0xff]  }
  0x28   :  { %744 = vmatprep.subr.bf16.mxu0 %v879_v6  ;;  %853 = vmatprep.subr.bf16.mxu1 %v879_v6  ;;  %v912_v31 = vld [vmem:[#allocation2 + $0xb0] ss:$8 sps:$4 sm:$0xff]   ;;  %v915_v33 = vld [vmem:[#allocation2 + $0xc4] ss:$8 sps:$4 sm:$0xff]   ;;  %v917_v34 = vld [vmem:[#allocation2 + $0x40] ss:$8 sps:$4 sm:$0xff]  }
  0x29   :  { %v918_v35 = vld [vmem:[#allocation2 + $0xc0] ss:$8 sps:$4 sm:$0xff]   ;;  %v919_v36 = vld [vmem:[#allocation2 + $0x54] ss:$8 sps:$4 sm:$0xff]   ;;  %v923_v38 = vld [vmem:[#allocation2 + $0x50] ss:$8 sps:$4 sm:$0xff]  }
  0x2a   :  { %v921_v37 = vld [vmem:[#allocation2 + $0xd4] ss:$8 sps:$4 sm:$0xff]   ;;  %v924_v39 = vld [vmem:[#allocation2 + $0xd0] ss:$8 sps:$4 sm:$0xff]   ;;  %v925_v40 = vld [vmem:[#allocation2 + $0x64] ss:$8 sps:$4 sm:$0xff]  }
  0x2b   :  { %745 = vmatpush3.bf16.msra.mxu0 %v880_v7  ;;  %861 = vmatpush3.bf16.msra.mxu1 %v880_v7  ;;  %v927_v41 = vld [vmem:[#allocation2 + $0xe4] ss:$8 sps:$4 sm:$0xff]   ;;  %v929_v42 = vld [vmem:[#allocation2 + $0x60] ss:$8 sps:$4 sm:$0xff]   ;;  %v931_v44 = vld [vmem:[#allocation2 + $0x74] ss:$8 sps:$4 sm:$0xff]  }
  0x2c   :  { %746 = vmatprep.subr.bf16.mxu0 %v881_v8  ;;  %854 = vmatprep.subr.bf16.mxu1 %v881_v8  ;;  %v930_v43 = vld [vmem:[#allocation2 + $0xe0] ss:$8 sps:$4 sm:$0xff]   ;;  %v933_v45 = vld [vmem:[#allocation2 + $0xf4] ss:$8 sps:$4 sm:$0xff]   ;;  %v935_v46 = vld [vmem:[#allocation2 + $0x70] ss:$8 sps:$4 sm:$0xff]  }
  0x2d   :  { %v936_v47 = vld [vmem:[#allocation2 + $0xf0] ss:$8 sps:$4 sm:$0xff]   ;;  %v1042_v50 = vld [vmem:[%s1084_s2] ss:$0 sm:$0xff]  ;;  %s1009_s2 = smov [#allocation7]  }
  0x2e   :  { %s674_s26 = sshll.u32 %s1009_s2, 4  ;;  %s675_s26 = int_to_ptr.vmem [resolvable:$true] %s674_s26 }
  0x2f   :  { %747 = vmatpush3.bf16.msra.mxu0 %v882_v9  ;;  %862 = vmatpush3.bf16.msra.mxu1 %v882_v9  ;;  %s977_s27 = scalar_lea.vmem %s675_s26, 4096  ;;  %p982_p11 = scmp.lt.s32.totalorder %s675_s26, %s675_s26 }
  0x30   :  { %748 = vmatprep.subr.bf16.mxu0 %v883_v10  ;;  %855 = vmatprep.subr.bf16.mxu1 %v883_v10  ;;  %p978_p10 = scmp.ne.s32.totalorder %s675_s26, %s977_s27  ;;  %p983_p12 = scmp.lt.s32.totalorder %s977_s27, %s977_s27 }
  0x32   :  { %p984_p13 = por %p983_p12, %p982_p11 }
  0x33   :  { %749 = vmatpush3.bf16.msra.mxu0 %v884_v13  ;;  %863 = vmatpush3.bf16.msra.mxu1 %v884_v13 }
  0x34   :  { %750 = vmatprep.subr.bf16.mxu0 %v885_v14  ;;  %856 = vmatprep.subr.bf16.mxu1 %v885_v14  ;;  %p985_p0 = pnand %p984_p13, %p978_p10 }
  0x37   :  { %751 = vmatpush3.bf16.msra.mxu0 %v886_v15  ;;  %864 = vmatpush3.bf16.msra.mxu1 %v886_v15 }
  0x38   :  { %752 = vmatprep.subr.bf16.mxu0 %v887_v16  ;;  %857 = vmatprep.subr.bf16.mxu1 %v887_v16 }
  0x3b   :  { %753 = vmatpush3.bf16.msra.mxu0 %v888_v17  ;;  %865 = vmatpush3.bf16.msra.mxu1 %v888_v17 }
  0x3e   :  { %477 = vmatmul.mubr.bf16.vlgmr.msra.gmra.mxu0 %v889_v18  ;;  %541 = vmatmul.mubr.bf16.vlgmr.msra.gmra.mxu1 %v892_v19 }
  0x3f   :  { %484 = vmatprep.mubr.bf16.mxu0 %v895_v20  ;;  %548 = vmatprep.mubr.bf16.mxu1 %v897_v21 }
  0x46   :  { %485 = vmatmul.mubr.bf16.gmra.mxu0 %v899_v22  ;;  %549 = vmatmul.mubr.bf16.gmra.mxu1 %v900_v23 }
  0x47   :  { %492 = vmatprep.mubr.bf16.mxu0 %v901_v24  ;;  %556 = vmatprep.mubr.bf16.mxu1 %v903_v25 }
  0x4e   :  { %493 = vmatmul.mubr.bf16.gmra.mxu0 %v905_v26  ;;  %557 = vmatmul.mubr.bf16.gmra.mxu1 %v906_v27 }
  0x4f   :  { %500 = vmatprep.mubr.bf16.mxu0 %v907_v28  ;;  %564 = vmatprep.mubr.bf16.mxu1 %v909_v29 }
  0x56   :  { %501 = vmatmul.mubr.bf16.gmra.mxu0 %v911_v30  ;;  %565 = vmatmul.mubr.bf16.gmra.mxu1 %v912_v31 }
  0x57   :  { %508 = vmatprep.mubr.bf16.mxu0 %v913_v32  ;;  %572 = vmatprep.mubr.bf16.mxu1 %v915_v33 }
  0x5e   :  { %509 = vmatmul.mubr.bf16.gmra.mxu0 %v917_v34  ;;  %573 = vmatmul.mubr.bf16.gmra.mxu1 %v918_v35 }
  0x5f   :  { %516 = vmatprep.mubr.bf16.mxu0 %v919_v36  ;;  %580 = vmatprep.mubr.bf16.mxu1 %v921_v37 }
  0x66   :  { %517 = vmatmul.mubr.bf16.gmra.mxu0 %v923_v38  ;;  %581 = vmatmul.mubr.bf16.gmra.mxu1 %v924_v39 }
  0x67   :  { %524 = vmatprep.mubr.bf16.mxu0 %v925_v40  ;;  %588 = vmatprep.mubr.bf16.mxu1 %v927_v41 }
  0x6e   :  { %525 = vmatmul.mubr.bf16.gmra.mxu0 %v929_v42  ;;  %589 = vmatmul.mubr.bf16.gmra.mxu1 %v930_v43 }
  0x6f   :  { %532 = vmatprep.mubr.bf16.mxu0 %v931_v44  ;;  %596 = vmatprep.mubr.bf16.mxu1 %v933_v45 }
  0x76   :  { %533 = vmatmul.mubr.bf16.gmra.mxu0 %v935_v46  ;;  %597 = vmatmul.mubr.bf16.gmra.mxu1 %v936_v47 }
  0xfe   :  { %v754_v48 = vpop.f32.mrf.mxu0  ;;  %v802_v49 = vpop.f32.mrf.mxu1 }
 0x100   :  { %v755_v51 = vpop.f32.mrf.mxu0  ;;  %v803_v52 = vpop.f32.mrf.mxu1 }
 0x101   :  { %v756_v53 = vadd.f32 %v755_v51, %v754_v48  ;;  %v804_v54 = vadd.f32 %v803_v52, %v802_v49 }
 0x102   :  { %v757_v55 = vpop.f32.mrf.mxu0  ;;  %v805_v56 = vpop.f32.mrf.mxu1 }
 0x103   :  { %v605_v57 = vadd.f32 %v756_v53, %v1042_v50  ;;  %v621_v58 = vadd.f32 %v804_v54, %v1042_v50 }
 0x104   :  { %v758_v59 = vpop.f32.mrf.mxu0  ;;  %v806_v60 = vpop.f32.mrf.mxu1 }
 0x105   :  { %637 = vst [vmem:[#allocation7] sm:$0xff] %v605_v57  ;;  %653 = vst [vmem:[#allocation7 + $0x80] sm:$0xff] %v621_v58  ;;  %v759_v61 = vadd.f32 %v758_v59, %v757_v55  ;;  %v807_v62 = vadd.f32 %v806_v60, %v805_v56 }
 0x106   :  { %v760_v63 = vpop.f32.mrf.mxu0  ;;  %v808_v0 = vpop.f32.mrf.mxu1 }
 0x107   :  { %v606_v1 = vadd.f32 %v759_v61, %v1042_v50  ;;  %v622_v2 = vadd.f32 %v807_v62, %v1042_v50 }
 0x108   :  { %v761_v3 = vpop.f32.mrf.mxu0  ;;  %v809_v4 = vpop.f32.mrf.mxu1 }
 0x109   :  { %638 = vst [vmem:[#allocation7 + $0x8] sm:$0xff] %v606_v1  ;;  %654 = vst [vmem:[#allocation7 + $0x88] sm:$0xff] %v622_v2  ;;  %v762_v5 = vadd.f32 %v761_v3, %v760_v63  ;;  %v810_v6 = vadd.f32 %v809_v4, %v808_v0 }
 0x10a   :  { %v763_v7 = vpop.f32.mrf.mxu0  ;;  %v811_v8 = vpop.f32.mrf.mxu1 }
 0x10b   :  { %v607_v9 = vadd.f32 %v762_v5, %v1042_v50  ;;  %v623_v10 = vadd.f32 %v810_v6, %v1042_v50 }
 0x10c   :  { %v764_v11 = vpop.f32.mrf.mxu0  ;;  %v812_v12 = vpop.f32.mrf.mxu1 }
 0x10d   :  { %639 = vst [vmem:[#allocation7 + $0x10] sm:$0xff] %v607_v9  ;;  %655 = vst [vmem:[#allocation7 + $0x90] sm:$0xff] %v623_v10  ;;  %v765_v13 = vadd.f32 %v764_v11, %v763_v7  ;;  %v813_v14 = vadd.f32 %v812_v12, %v811_v8 }
 0x10e   :  { %v766_v15 = vpop.f32.mrf.mxu0  ;;  %v814_v16 = vpop.f32.mrf.mxu1 }
 0x10f   :  { %v608_v17 = vadd.f32 %v765_v13, %v1042_v50  ;;  %v624_v18 = vadd.f32 %v813_v14, %v1042_v50 }
 0x110   :  { %v767_v19 = vpop.f32.mrf.mxu0  ;;  %v815_v20 = vpop.f32.mrf.mxu1 }
 0x111   :  { %640 = vst [vmem:[#allocation7 + $0x18] sm:$0xff] %v608_v17  ;;  %656 = vst [vmem:[#allocation7 + $0x98] sm:$0xff] %v624_v18  ;;  %v768_v21 = vadd.f32 %v767_v19, %v766_v15  ;;  %v816_v22 = vadd.f32 %v815_v20, %v814_v16 }
 0x112   :  { %v769_v23 = vpop.f32.mrf.mxu0  ;;  %v817_v24 = vpop.f32.mrf.mxu1 }
 0x113   :  { %v609_v25 = vadd.f32 %v768_v21, %v1042_v50  ;;  %v625_v26 = vadd.f32 %v816_v22, %v1042_v50 }
 0x114   :  { %v770_v27 = vpop.f32.mrf.mxu0  ;;  %v818_v28 = vpop.f32.mrf.mxu1 }
 0x115   :  { %641 = vst [vmem:[#allocation7 + $0x20] sm:$0xff] %v609_v25  ;;  %657 = vst [vmem:[#allocation7 + $0xa0] sm:$0xff] %v625_v26  ;;  %v771_v29 = vadd.f32 %v770_v27, %v769_v23  ;;  %v819_v30 = vadd.f32 %v818_v28, %v817_v24 }
 0x116   :  { %v772_v31 = vpop.f32.mrf.mxu0  ;;  %v820_v32 = vpop.f32.mrf.mxu1 }
 0x117   :  { %v610_v33 = vadd.f32 %v771_v29, %v1042_v50  ;;  %v626_v34 = vadd.f32 %v819_v30, %v1042_v50 }
 0x118   :  { %v773_v35 = vpop.f32.mrf.mxu0  ;;  %v821_v36 = vpop.f32.mrf.mxu1 }
 0x119   :  { %642 = vst [vmem:[#allocation7 + $0x28] sm:$0xff] %v610_v33  ;;  %658 = vst [vmem:[#allocation7 + $0xa8] sm:$0xff] %v626_v34  ;;  %v774_v37 = vadd.f32 %v773_v35, %v772_v31  ;;  %v822_v38 = vadd.f32 %v821_v36, %v820_v32 }
 0x11a   :  { %v775_v39 = vpop.f32.mrf.mxu0  ;;  %v823_v40 = vpop.f32.mrf.mxu1 }
 0x11b   :  { %v611_v41 = vadd.f32 %v774_v37, %v1042_v50  ;;  %v627_v42 = vadd.f32 %v822_v38, %v1042_v50 }
 0x11c   :  { %v776_v43 = vpop.f32.mrf.mxu0  ;;  %v824_v44 = vpop.f32.mrf.mxu1 }
 0x11d   :  { %643 = vst [vmem:[#allocation7 + $0x30] sm:$0xff] %v611_v41  ;;  %659 = vst [vmem:[#allocation7 + $0xb0] sm:$0xff] %v627_v42  ;;  %v777_v45 = vadd.f32 %v776_v43, %v775_v39  ;;  %v825_v46 = vadd.f32 %v824_v44, %v823_v40 }
 0x11e   :  { %v778_v47 = vpop.f32.mrf.mxu0  ;;  %v826_v48 = vpop.f32.mrf.mxu1 }
 0x11f   :  { %v612_v49 = vadd.f32 %v777_v45, %v1042_v50  ;;  %v628_v51 = vadd.f32 %v825_v46, %v1042_v50 }
 0x120   :  { %v779_v52 = vpop.f32.mrf.mxu0  ;;  %v827_v53 = vpop.f32.mrf.mxu1 }
 0x121   :  { %644 = vst [vmem:[#allocation7 + $0x38] sm:$0xff] %v612_v49  ;;  %660 = vst [vmem:[#allocation7 + $0xb8] sm:$0xff] %v628_v51  ;;  %v780_v54 = vadd.f32 %v779_v52, %v778_v47  ;;  %v828_v55 = vadd.f32 %v827_v53, %v826_v48 }
 0x122   :  { %v781_v56 = vpop.f32.mrf.mxu0  ;;  %v829_v57 = vpop.f32.mrf.mxu1 }
 0x123   :  { %v613_v58 = vadd.f32 %v780_v54, %v1042_v50  ;;  %v629_v59 = vadd.f32 %v828_v55, %v1042_v50 }
 0x124   :  { %v782_v60 = vpop.f32.mrf.mxu0  ;;  %v830_v61 = vpop.f32.mrf.mxu1 }
 0x125   :  { %645 = vst [vmem:[#allocation7 + $0x40] sm:$0xff] %v613_v58  ;;  %661 = vst [vmem:[#allocation7 + $0xc0] sm:$0xff] %v629_v59  ;;  %v783_v62 = vadd.f32 %v782_v60, %v781_v56  ;;  %v831_v63 = vadd.f32 %v830_v61, %v829_v57 }
 0x126   :  { %v784_v0 = vpop.f32.mrf.mxu0  ;;  %v832_v1 = vpop.f32.mrf.mxu1 }
 0x127   :  { %v614_v2 = vadd.f32 %v783_v62, %v1042_v50  ;;  %v630_v3 = vadd.f32 %v831_v63, %v1042_v50 }
 0x128   :  { %v785_v4 = vpop.f32.mrf.mxu0  ;;  %v833_v5 = vpop.f32.mrf.mxu1 }
 0x129   :  { %646 = vst [vmem:[#allocation7 + $0x48] sm:$0xff] %v614_v2  ;;  %662 = vst [vmem:[#allocation7 + $0xc8] sm:$0xff] %v630_v3  ;;  %v786_v6 = vadd.f32 %v785_v4, %v784_v0  ;;  %v834_v7 = vadd.f32 %v833_v5, %v832_v1 }
 0x12a   :  { %v787_v8 = vpop.f32.mrf.mxu0  ;;  %v835_v9 = vpop.f32.mrf.mxu1 }
 0x12b   :  { %v615_v10 = vadd.f32 %v786_v6, %v1042_v50  ;;  %v631_v11 = vadd.f32 %v834_v7, %v1042_v50 }
 0x12c   :  { %v788_v12 = vpop.f32.mrf.mxu0  ;;  %v836_v13 = vpop.f32.mrf.mxu1 }
 0x12d   :  { %647 = vst [vmem:[#allocation7 + $0x50] sm:$0xff] %v615_v10  ;;  %663 = vst [vmem:[#allocation7 + $0xd0] sm:$0xff] %v631_v11  ;;  %v789_v14 = vadd.f32 %v788_v12, %v787_v8  ;;  %v837_v15 = vadd.f32 %v836_v13, %v835_v9 }
 0x12e   :  { %v790_v16 = vpop.f32.mrf.mxu0  ;;  %v838_v17 = vpop.f32.mrf.mxu1 }
 0x12f   :  { %v616_v18 = vadd.f32 %v789_v14, %v1042_v50  ;;  %v632_v19 = vadd.f32 %v837_v15, %v1042_v50 }
 0x130   :  { %v791_v20 = vpop.f32.mrf.mxu0  ;;  %v839_v21 = vpop.f32.mrf.mxu1 }
 0x131   :  { %648 = vst [vmem:[#allocation7 + $0x58] sm:$0xff] %v616_v18  ;;  %664 = vst [vmem:[#allocation7 + $0xd8] sm:$0xff] %v632_v19  ;;  %v792_v22 = vadd.f32 %v791_v20, %v790_v16  ;;  %v840_v23 = vadd.f32 %v839_v21, %v838_v17 }
 0x132   :  { %v793_v24 = vpop.f32.mrf.mxu0  ;;  %v841_v25 = vpop.f32.mrf.mxu1 }
 0x133   :  { %v617_v26 = vadd.f32 %v792_v22, %v1042_v50  ;;  %v633_v27 = vadd.f32 %v840_v23, %v1042_v50 }
 0x134   :  { %v794_v28 = vpop.f32.mrf.mxu0  ;;  %v842_v29 = vpop.f32.mrf.mxu1 }
 0x135   :  { %649 = vst [vmem:[#allocation7 + $0x60] sm:$0xff] %v617_v26  ;;  %665 = vst [vmem:[#allocation7 + $0xe0] sm:$0xff] %v633_v27  ;;  %v795_v30 = vadd.f32 %v794_v28, %v793_v24  ;;  %v843_v31 = vadd.f32 %v842_v29, %v841_v25 }
 0x136   :  { %v796_v32 = vpop.f32.mrf.mxu0  ;;  %v844_v33 = vpop.f32.mrf.mxu1 }
 0x137   :  { %v618_v34 = vadd.f32 %v795_v30, %v1042_v50  ;;  %v634_v35 = vadd.f32 %v843_v31, %v1042_v50 }
 0x138   :  { %v797_v36 = vpop.f32.mrf.mxu0  ;;  %v845_v37 = vpop.f32.mrf.mxu1 }
 0x139   :  { %650 = vst [vmem:[#allocation7 + $0x68] sm:$0xff] %v618_v34  ;;  %666 = vst [vmem:[#allocation7 + $0xe8] sm:$0xff] %v634_v35  ;;  %v798_v38 = vadd.f32 %v797_v36, %v796_v32  ;;  %v846_v39 = vadd.f32 %v845_v37, %v844_v33 }
 0x13a   :  { %v799_v40 = vpop.f32.mrf.mxu0  ;;  %v847_v41 = vpop.f32.mrf.mxu1 }
 0x13b   :  { %v619_v42 = vadd.f32 %v798_v38, %v1042_v50  ;;  %v635_v43 = vadd.f32 %v846_v39, %v1042_v50 }
 0x13c   :  { %v800_v44 = vpop.f32.mrf.mxu0  ;;  %v848_v45 = vpop.f32.mrf.mxu1 }
 0x13d   :  { %651 = vst [vmem:[#allocation7 + $0x70] sm:$0xff] %v619_v42  ;;  %667 = vst [vmem:[#allocation7 + $0xf0] sm:$0xff] %v635_v43  ;;  %v801_v46 = vadd.f32 %v800_v44, %v799_v40  ;;  %v849_v47 = vadd.f32 %v848_v45, %v847_v41 }
 0x13f   :  { %v620_v48 = vadd.f32 %v801_v46, %v1042_v50  ;;  %v636_v49 = vadd.f32 %v849_v47, %v1042_v50 }
 0x141   :  { %652 = vst [vmem:[#allocation7 + $0x78] sm:$0xff] %v620_v48  ;;  %668 = vst [vmem:[#allocation7 + $0xf8] sm:$0xff] %v636_v49 }
 0x142   :  { %988 = shalt.err (!%p985_p0)
}
 0x143   :  { %680 = dma.vmem_to_hbm [thread:$0]  %s675_s26, 4096, %s1085_s3, [#allocation4], %s1004_s15, %s1004_s15, %s1005_s16  }
 0x144   :  { %1001 = dma.done.wait [#allocation4], 4096  }
 0x145   :  { %1002 = vsyncadd [#allocation4], 4294963200 }
 0x146   :  { %684 = vsyncpa [#allocation3], 1 }
 0x147   :  { %685 = vsyncpa [#allocation6], 1 }
 0x148   :  { %686 = vsyncpa [#allocation4], 1 }

</bundles_post_ra>
